<compile_context>
chip_gen: v7x
topology: tpu7x:2x2x1
jax: 0.10.0
libtpu: 0.0.40
codegen_flags: <defaults>
</compile_context>

<pallas_src>
import jax
import jax.numpy as jnp
from jax import lax
from jax.experimental import pallas as pl
from jax.experimental.pallas import tpu as pltpu


def _expand_stage_weights(w_dw, w_pw, L, C, W, K):
    """Fuse depthwise taps + 1x1 conv into K banded (L, L) lane matrices E_i = D_i @ M.

    Lane layout: lane = plane*W + w, plane = img_in_pair*C + c.
    D_i[l_in, l_out] = w_dw[c(l_out), i, w(l_in)-w(l_out)+p]  (same plane, |dw| <= p, else 0)
    M[l, l2]         = w_pw[c(l2), c(l)]                      (same image & same w, else 0)
    """
    p = K // 2
    lanes = jnp.arange(L)
    plane = lanes // W
    wl = lanes % W
    cl = plane % C
    img = plane // C

    # pointwise lane matrix
    same_pw = (img[:, None] == img[None, :]) & (wl[:, None] == wl[None, :])
    M = jnp.where(same_pw, w_pw[cl[None, :], cl[:, None]], 0.0).astype(jnp.float32)

    # depthwise banded matrices (horizontal taps + SAME horizontal padding), fused with M
    jmat = wl[:, None] - wl[None, :] + p                 # [l_in, l_out] : w_in - w_out + p
    same_plane = plane[:, None] == plane[None, :]
    valid = same_plane & (jmat >= 0) & (jmat < K)
    jc = jnp.clip(jmat, 0, K - 1)
    Es = []
    for i in range(K):
        w_dw_i = w_dw[:, i, :]                           # (C, K)
        D_i = jnp.where(valid, w_dw_i[cl[None, :], jc], 0.0).astype(jnp.float32)
        Es.append(jnp.dot(D_i, M, precision=lax.Precision.HIGHEST))
    return jnp.stack(Es, axis=0)                         # (K, L, L)


def _bias_lanes(b_c, L, C, W):
    cl = (jnp.arange(L) // W) % C
    return b_c[cl].reshape(1, L).astype(jnp.float32)


def _make_kernel(H, Hh, L, K):
    p = K // 2

    def kernel(e1_ref, e2_ref, b1_ref, b2_ref, x_ref, o_ref, pbuf_ref):
        # zero only the 2p vertical guard rows; the interior is fully overwritten below
        if p > 0:
            pbuf_ref[0:p, :] = jnp.zeros((p, L), jnp.float32)
            pbuf_ref[p + H:p + H + p, :] = jnp.zeros((p, L), jnp.float32)
        # one full-width aligned copy of the lane-dense input slab (cast once)
        pbuf_ref[p:p + H, :] = x_ref[0].astype(jnp.float32)

        # stage 1: depthwise + 1x1 fused as K MXU matmuls over the packed lane dim.
        # Computed for the full image height: its top/bottom rows are this step's halo.
        acc = jnp.dot(pbuf_ref[0:H, :], e1_ref[0], preferred_element_type=jnp.float32)
        for i in range(1, K):
            acc = acc + jnp.dot(pbuf_ref[i:i + H, :], e1_ref[i],
                                preferred_element_type=jnp.float32)
        y1 = jnp.maximum(acc + b1_ref[...], 0.0)

        # write stage-1 activations back into the padded interior (guard rows stay zero)
        pbuf_ref[p:p + H, :] = y1

        # stage 2: same fusion, restricted to this grid step's Hh output rows
        q0 = pl.multiple_of(pl.program_id(1) * Hh, Hh)
        acc = jnp.dot(pbuf_ref[pl.ds(q0, Hh), :], e2_ref[0],
                      preferred_element_type=jnp.float32)
        for i in range(1, K):
            acc = acc + jnp.dot(pbuf_ref[pl.ds(q0 + i, Hh), :], e2_ref[i],
                                preferred_element_type=jnp.float32)
        # single full-width lane-dense store of the packed output block
        o_ref[0] = jnp.maximum(acc + b2_ref[...], 0.0).astype(o_ref.dtype)

    return kernel


def dw_conv_block(x, w_dw1, w_pw1, w_dw2, w_pw2,
                  b_dw1=None, b_pw1=None, b_dw2=None, b_pw2=None):
    """x: (N, C, H, W). w_dw*: (C, K, K) depthwise weights (groups=C).
    w_pw*: (C, C) pointwise weights laid out (out, in). Biases optional. act = ReLU."""
    N, C, H, W = x.shape
    K = w_dw1.shape[-1]
    p = K // 2
    CW = C * W

    # pack enough images per grid step to make the packed lane width a multiple of 128
    if CW % 128 == 0:
        PAIR = 1
    elif 128 % CW == 0:
        PAIR = 128 // CW
    else:
        PAIR = 1                       # fallback: correct, just not lane-optimal
    L = PAIR * CW

    # pad the batch so it divides evenly into lane-packed groups
    Npad = -(-N // PAIR) * PAIR
    if Npad != N:
        x = jnp.concatenate([x, jnp.zeros((Npad - N,) + x.shape[1:], x.dtype)], axis=0)
    NB = Npad // PAIR

    # 2-way parallel split over row halves (feeds both v7x TensorCores even at NB=1)
    GH = 2 if (H % 16 == 0) else 1
    Hh = H // GH

    def as_c(b):
        return jnp.zeros((C,), jnp.float32) if b is None else b.astype(jnp.float32)

    pw1 = w_pw1.astype(jnp.float32)
    pw2 = w_pw2.astype(jnp.float32)
    # fold each (depthwise, pointwise) bias pair into one per-stage per-lane bias:
    #   pw(dw(x) + b_dw) + b_pw == pw(dw(x)) + (pw @ b_dw + b_pw)
    bvec1 = _bias_lanes(pw1 @ as_c(b_dw1) + as_c(b_pw1), L, C, W)
    bvec2 = _bias_lanes(pw2 @ as_c(b_dw2) + as_c(b_pw2), L, C, W)

    E1 = _expand_stage_weights(w_dw1.astype(jnp.float32), pw1, L, C, W, K)   # (K, L, L)
    E2 = _expand_stage_weights(w_dw2.astype(jnp.float32), pw2, L, C, W, K)

    # lane-dense packing: lane = (img_in_pair*C + c)*W + w   ->   (NB, H, L)
    x_packed = x.reshape(NB, PAIR, C, H, W).transpose(0, 3, 1, 2, 4).reshape(NB, H, L)

    kernel = _make_kernel(H, Hh, L, K)
    out_packed = pl.pallas_call(
        kernel,
        out_shape=jax.ShapeDtypeStruct((NB, H, L), x.dtype),
        grid=(NB, GH),
        in_specs=[
            pl.BlockSpec((K, L, L), lambda nb, gh: (0, 0, 0)),   # fused dw+pw lane matrices, stage 1
            pl.BlockSpec((K, L, L), lambda nb, gh: (0, 0, 0)),   # fused dw+pw lane matrices, stage 2
            pl.BlockSpec((1, L), lambda nb, gh: (0, 0)),         # folded bias lanes, stage 1
            pl.BlockSpec((1, L), lambda nb, gh: (0, 0)),         # folded bias lanes, stage 2
            pl.BlockSpec((1, H, L), lambda nb, gh: (nb, 0, 0)),  # packed lane-dense input slab
        ],
        out_specs=pl.BlockSpec((1, Hh, L), lambda nb, gh: (nb, gh, 0)),
        scratch_shapes=[pltpu.VMEM((H + 2 * p, L), jnp.float32)],  # row-padded working buffer
        compiler_params=pltpu.CompilerParams(
            dimension_semantics=("parallel", "parallel")),
    )(E1, E2, bvec1, bvec2, x_packed)

    # unpack the lane-dense (NB, H, L) slab back to (N, C, H, W) — pure layout plumbing
    out = out_packed.reshape(NB, H, PAIR, C, W).transpose(0, 2, 3, 1, 4).reshape(Npad, C, H, W)
    return out[:N]


def _reference(x, w_dw1, w_pw1, w_dw2, w_pw2, b_dw1, b_pw1, b_dw2, b_pw2):
    """Pure-JAX reference matching the PyTorch DwConvBlock forward (act = ReLU)."""
    C = x.shape[1]
    K = w_dw1.shape[-1]
    dn = ("NCHW", "OIHW", "NCHW")
    hp = lax.Precision.HIGHEST

    def dw(z, w, b):
        y = lax.conv_general_dilated(z, w.reshape(C, 1, K, K), (1, 1), "SAME",
                                     dimension_numbers=dn, feature_group_count=C,
                                     precision=hp)
        return y + b.reshape(1, C, 1, 1)

    def pw(z, w, b):
        y = lax.conv_general_dilated(z, w.reshape(C, C, 1, 1), (1, 1), "SAME",
                                     dimension_numbers=dn, precision=hp)
        return y + b.reshape(1, C, 1, 1)

    y = jax.nn.relu(pw(dw(x, w_dw1, b_dw1), w_pw1, b_pw1))
    y = jax.nn.relu(pw(dw(y, w_dw2, b_dw2), w_pw2, b_pw2))
    return y


if __name__ == "__main__":
    key = jax.random.PRNGKey(0)
    ks = jax.random.split(key, 9)

    # n_feat=4, kernel_size=3, bias=True, act=ReLU
    N, C, H, W, K = 2, 4, 16, 16, 3
    x = jax.random.normal(ks[0], (N, C, H, W), dtype=jnp.float32)
    w_dw1 = jax.random.normal(ks[1], (C, K, K), dtype=jnp.float32) * 0.2
    w_pw1 = jax.random.normal(ks[2], (C, C), dtype=jnp.float32) * 0.3
    w_dw2 = jax.random.normal(ks[3], (C, K, K), dtype=jnp.float32) * 0.2
    w_pw2 = jax.random.normal(ks[4], (C, C), dtype=jnp.float32) * 0.3
    b_dw1 = jax.random.normal(ks[5], (C,), dtype=jnp.float32) * 0.1
    b_pw1 = jax.random.normal(ks[6], (C,), dtype=jnp.float32) * 0.1
    b_dw2 = jax.random.normal(ks[7], (C,), dtype=jnp.float32) * 0.1
    b_pw2 = jax.random.normal(ks[8], (C,), dtype=jnp.float32) * 0.1

    out = dw_conv_block(x, w_dw1, w_pw1, w_dw2, w_pw2, b_dw1, b_pw1, b_dw2, b_pw2)
    out = jax.block_until_ready(out)

    ref = _reference(x, w_dw1, w_pw1, w_dw2, w_pw2, b_dw1, b_pw1, b_dw2, b_pw2)
    assert out.shape == (N, C, H, W)
    err = float(jnp.max(jnp.abs(out - ref)))
    # tolerance covers MXU f32 multi-pass behaviour across TPU generations; genuine
    # indexing / packing bugs produce errors orders of magnitude larger than this.
    assert err < 2e-2, f"mismatch vs reference conv: {err}"

    print("KERNEL_OK")
</pallas_src>

<mosaic_0001>
module attributes {stable_mosaic.version = 11 : i64} {
  func.func @kernel(%arg0: i32, %arg1: i32, %arg2: memref<3x128x128xf32, #tpu.memory_space<vmem>>, %arg3: memref<3x128x128xf32, #tpu.memory_space<vmem>>, %arg4: memref<1x128xf32, #tpu.memory_space<vmem>>, %arg5: memref<1x128xf32, #tpu.memory_space<vmem>>, %arg6: memref<1x16x128xf32, #tpu.memory_space<vmem>>, %arg7: memref<1x8x128xf32, #tpu.memory_space<vmem>>, %arg8: memref<18x128xf32, #tpu.memory_space<vmem>>) attributes {dimension_semantics = [#tpu.dimension_semantics<parallel>, #tpu.dimension_semantics<parallel>], iteration_bounds = array<i64: 1, 2>, scalar_prefetch = 0 : i64, scratch_operands = 1 : i64, tpu.core_type = #tpu.core_type<tc>, window_params = [{pipeline_mode = #tpu.pipeline_mode<synchronous>, transform_indices = @transform_0, window_bounds = array<i64: 3, 128, 128>}, {pipeline_mode = #tpu.pipeline_mode<synchronous>, transform_indices = @transform_1, window_bounds = array<i64: 3, 128, 128>}, {pipeline_mode = #tpu.pipeline_mode<synchronous>, transform_indices = @transform_2, window_bounds = array<i64: 1, 128>}, {pipeline_mode = #tpu.pipeline_mode<synchronous>, transform_indices = @transform_3, window_bounds = array<i64: 1, 128>}, {transform_indices = @transform_4, window_bounds = array<i64: 1, 16, 128>}, {transform_indices = @transform_5, window_bounds = array<i64: 1, 8, 128>}]} {
    %cst = arith.constant 0.000000e+00 : f32
    %0 = vector.broadcast %cst : f32 to vector<1x128xf32>
    %c0 = arith.constant 0 : index
    %c0_0 = arith.constant 0 : index
    %1 = vector.load %arg8[%c0, %c0_0] : memref<18x128xf32, #tpu.memory_space<vmem>>, vector<1x128xf32>
    tpu.vector_store %arg8[%c0, %c0_0], %0 {strides = array<i32>} : memref<18x128xf32, #tpu.memory_space<vmem>>, vector<1x128xf32>,
    %cst_1 = arith.constant 0.000000e+00 : f32
    %2 = vector.broadcast %cst_1 : f32 to vector<1x128xf32>
    %c17 = arith.constant 17 : index
    %c0_2 = arith.constant 0 : index
    %3 = vector.load %arg8[%c17, %c0_2] : memref<18x128xf32, #tpu.memory_space<vmem>>, vector<1x128xf32>
    tpu.vector_store %arg8[%c17, %c0_2], %2 {strides = array<i32>} : memref<18x128xf32, #tpu.memory_space<vmem>>, vector<1x128xf32>,
    %c0_3 = arith.constant 0 : index
    %c0_4 = arith.constant 0 : index
    %c0_5 = arith.constant 0 : index
    %4 = vector.load %arg6[%c0_3, %c0_4, %c0_5] : memref<1x16x128xf32, #tpu.memory_space<vmem>>, vector<1x16x128xf32>
    %5 = vector.shape_cast %4 : vector<1x16x128xf32> to vector<16x128xf32>
    %c1 = arith.constant 1 : index
    %c0_6 = arith.constant 0 : index
    %6 = vector.load %arg8[%c1, %c0_6] : memref<18x128xf32, #tpu.memory_space<vmem>>, vector<16x128xf32>
    tpu.vector_store %arg8[%c1, %c0_6], %5 {strides = array<i32>} : memref<18x128xf32, #tpu.memory_space<vmem>>, vector<16x128xf32>,
    %c0_7 = arith.constant 0 : index
    %c0_8 = arith.constant 0 : index
    %7 = vector.load %arg8[%c0_7, %c0_8] : memref<18x128xf32, #tpu.memory_space<vmem>>, vector<16x128xf32>
    %c0_9 = arith.constant 0 : index
    %c0_10 = arith.constant 0 : index
    %c0_11 = arith.constant 0 : index
    %8 = vector.load %arg2[%c0_9, %c0_10, %c0_11] : memref<3x128x128xf32, #tpu.memory_space<vmem>>, vector<1x128x128xf32>
    %9 = vector.shape_cast %8 : vector<1x128x128xf32> to vector<128x128xf32>
    %cst_12 = arith.constant dense<0.000000e+00> : vector<16x128xf32>
    %10 = tpu.matmul %7, %9, %cst_12 {dimension_numbers = #tpu.dot_dimension_numbers<[1], [0], [0], [1], [0, 0, 1, 1], [], []>} : vector<16x128xf32>, vector<128x128xf32>, vector<16x128xf32> -> vector<16x128xf32>
    %c1_13 = arith.constant 1 : index
    %c0_14 = arith.constant 0 : index
    %11 = vector.load %arg8[%c1_13, %c0_14] : memref<18x128xf32, #tpu.memory_space<vmem>>, vector<16x128xf32>
    %c1_15 = arith.constant 1 : index
    %c0_16 = arith.constant 0 : index
    %c0_17 = arith.constant 0 : index
    %12 = vector.load %arg2[%c1_15, %c0_16, %c0_17] : memref<3x128x128xf32, #tpu.memory_space<vmem>>, vector<1x128x128xf32>
    %13 = vector.shape_cast %12 : vector<1x128x128xf32> to vector<128x128xf32>
    %cst_18 = arith.constant dense<0.000000e+00> : vector<16x128xf32>
    %14 = tpu.matmul %11, %13, %cst_18 {dimension_numbers = #tpu.dot_dimension_numbers<[1], [0], [0], [1], [0, 0, 1, 1], [], []>} : vector<16x128xf32>, vector<128x128xf32>, vector<16x128xf32> -> vector<16x128xf32>
    %15 = arith.addf %10, %14 : vector<16x128xf32>
    %c2 = arith.constant 2 : index
    %c0_19 = arith.constant 0 : index
    %16 = vector.load %arg8[%c2, %c0_19] : memref<18x128xf32, #tpu.memory_space<vmem>>, vector<16x128xf32>
    %c2_20 = arith.constant 2 : index
    %c0_21 = arith.constant 0 : index
    %c0_22 = arith.constant 0 : index
    %17 = vector.load %arg2[%c2_20, %c0_21, %c0_22] : memref<3x128x128xf32, #tpu.memory_space<vmem>>, vector<1x128x128xf32>
    %18 = vector.shape_cast %17 : vector<1x128x128xf32> to vector<128x128xf32>
    %cst_23 = arith.constant dense<0.000000e+00> : vector<16x128xf32>
    %19 = tpu.matmul %16, %18, %cst_23 {dimension_numbers = #tpu.dot_dimension_numbers<[1], [0], [0], [1], [0, 0, 1, 1], [], []>} : vector<16x128xf32>, vector<128x128xf32>, vector<16x128xf32> -> vector<16x128xf32>
    %20 = arith.addf %15, %19 : vector<16x128xf32>
    %c0_24 = arith.constant 0 : index
    %c0_25 = arith.constant 0 : index
    %21 = vector.load %arg4[%c0_24, %c0_25] : memref<1x128xf32, #tpu.memory_space<vmem>>, vector<1x128xf32>
    %22 = vector.broadcast %21 : vector<1x128xf32> to vector<16x128xf32>
    %23 = arith.addf %20, %22 : vector<16x128xf32>
    %cst_26 = arith.constant 0.000000e+00 : f32
    %24 = vector.broadcast %cst_26 : f32 to vector<16x128xf32>
    %25 = arith.maximumf %23, %24 : vector<16x128xf32>
    %c1_27 = arith.constant 1 : index
    %c0_28 = arith.constant 0 : index
    %26 = vector.load %arg8[%c1_27, %c0_28] : memref<18x128xf32, #tpu.memory_space<vmem>>, vector<16x128xf32>
    tpu.vector_store %arg8[%c1_27, %c0_28], %25 {strides = array<i32>} : memref<18x128xf32, #tpu.memory_space<vmem>>, vector<16x128xf32>,
    %c8_i32 = arith.constant 8 : i32
    %27 = arith.muli %arg1, %c8_i32 : i32
    %28 = tpu.assume_multiple %27, 8 : i32
    %29 = arith.index_cast %28 : i32 to index
    %c0_29 = arith.constant 0 : index
    %30 = vector.load %arg8[%29, %c0_29] : memref<18x128xf32, #tpu.memory_space<vmem>>, vector<8x128xf32>
    %c0_30 = arith.constant 0 : index
    %c0_31 = arith.constant 0 : index
    %c0_32 = arith.constant 0 : index
    %31 = vector.load %arg3[%c0_30, %c0_31, %c0_32] : memref<3x128x128xf32, #tpu.memory_space<vmem>>, vector<1x128x128xf32>
    %32 = vector.shape_cast %31 : vector<1x128x128xf32> to vector<128x128xf32>
    %cst_33 = arith.constant dense<0.000000e+00> : vector<8x128xf32>
    %33 = tpu.matmul %30, %32, %cst_33 {dimension_numbers = #tpu.dot_dimension_numbers<[1], [0], [0], [1], [0, 0, 1, 1], [], []>} : vector<8x128xf32>, vector<128x128xf32>, vector<8x128xf32> -> vector<8x128xf32>
    %c1_i32 = arith.constant 1 : i32
    %34 = arith.addi %28, %c1_i32 : i32
    %35 = arith.index_cast %34 : i32 to index
    %c0_34 = arith.constant 0 : index
    %36 = vector.load %arg8[%35, %c0_34] : memref<18x128xf32, #tpu.memory_space<vmem>>, vector<8x128xf32>
    %c1_35 = arith.constant 1 : index
    %c0_36 = arith.constant 0 : index
    %c0_37 = arith.constant 0 : index
    %37 = vector.load %arg3[%c1_35, %c0_36, %c0_37] : memref<3x128x128xf32, #tpu.memory_space<vmem>>, vector<1x128x128xf32>
    %38 = vector.shape_cast %37 : vector<1x128x128xf32> to vector<128x128xf32>
    %cst_38 = arith.constant dense<0.000000e+00> : vector<8x128xf32>
    %39 = tpu.matmul %36, %38, %cst_38 {dimension_numbers = #tpu.dot_dimension_numbers<[1], [0], [0], [1], [0, 0, 1, 1], [], []>} : vector<8x128xf32>, vector<128x128xf32>, vector<8x128xf32> -> vector<8x128xf32>
    %40 = arith.addf %33, %39 : vector<8x128xf32>
    %c2_i32 = arith.constant 2 : i32
    %41 = arith.addi %28, %c2_i32 : i32
    %42 = arith.index_cast %41 : i32 to index
    %c0_39 = arith.constant 0 : index
    %43 = vector.load %arg8[%42, %c0_39] : memref<18x128xf32, #tpu.memory_space<vmem>>, vector<8x128xf32>
    %c2_40 = arith.constant 2 : index
    %c0_41 = arith.constant 0 : index
    %c0_42 = arith.constant 0 : index
    %44 = vector.load %arg3[%c2_40, %c0_41, %c0_42] : memref<3x128x128xf32, #tpu.memory_space<vmem>>, vector<1x128x128xf32>
    %45 = vector.shape_cast %44 : vector<1x128x128xf32> to vector<128x128xf32>
    %cst_43 = arith.constant dense<0.000000e+00> : vector<8x128xf32>
    %46 = tpu.matmul %43, %45, %cst_43 {dimension_numbers = #tpu.dot_dimension_numbers<[1], [0], [0], [1], [0, 0, 1, 1], [], []>} : vector<8x128xf32>, vector<128x128xf32>, vector<8x128xf32> -> vector<8x128xf32>
    %47 = arith.addf %40, %46 : vector<8x128xf32>
    %c0_44 = arith.constant 0 : index
    %c0_45 = arith.constant 0 : index
    %48 = vector.load %arg5[%c0_44, %c0_45] : memref<1x128xf32, #tpu.memory_space<vmem>>, vector<1x128xf32>
    %49 = vector.broadcast %48 : vector<1x128xf32> to vector<8x128xf32>
    %50 = arith.addf %47, %49 : vector<8x128xf32>
    %cst_46 = arith.constant 0.000000e+00 : f32
    %51 = vector.broadcast %cst_46 : f32 to vector<8x128xf32>
    %52 = arith.maximumf %50, %51 : vector<8x128xf32>
    %c0_47 = arith.constant 0 : index
    %c0_48 = arith.constant 0 : index
    %c0_49 = arith.constant 0 : index
    %53 = vector.load %arg7[%c0_47, %c0_48, %c0_49] : memref<1x8x128xf32, #tpu.memory_space<vmem>>, vector<1x8x128xf32>
    %54 = vector.shape_cast %53 : vector<1x8x128xf32> to vector<8x128xf32>
    %55 = vector.shape_cast %52 : vector<8x128xf32> to vector<1x8x128xf32>
    tpu.vector_store %arg7[%c0_47, %c0_48, %c0_49], %55 {strides = array<i32>} : memref<1x8x128xf32, #tpu.memory_space<vmem>>, vector<1x8x128xf32>,
    return
  }
  func.func @transform_0(%arg0: i32, %arg1: i32) -> (i32, i32, i32) {
    %c0_i32 = arith.constant 0 : i32
    %c0_i32_0 = arith.constant 0 : i32
    %c0_i32_1 = arith.constant 0 : i32
    %c0_i32_2 = arith.constant 0 : i32
    return %c0_i32, %c0_i32_0, %c0_i32_1 : i32, i32, i32
  }
  func.func @transform_1(%arg0: i32, %arg1: i32) -> (i32, i32, i32) {
    %c0_i32 = arith.constant 0 : i32
    %c0_i32_0 = arith.constant 0 : i32
    %c0_i32_1 = arith.constant 0 : i32
    %c0_i32_2 = arith.constant 0 : i32
    return %c0_i32, %c0_i32_0, %c0_i32_1 : i32, i32, i32
  }
  func.func @transform_2(%arg0: i32, %arg1: i32) -> (i32, i32) {
    %c0_i32 = arith.constant 0 : i32
    %c0_i32_0 = arith.constant 0 : i32
    %c0_i32_1 = arith.constant 0 : i32
    return %c0_i32, %c0_i32_0 : i32, i32
  }
  func.func @transform_3(%arg0: i32, %arg1: i32) -> (i32, i32) {
    %c0_i32 = arith.constant 0 : i32
    %c0_i32_0 = arith.constant 0 : i32
    %c0_i32_1 = arith.constant 0 : i32
    return %c0_i32, %c0_i32_0 : i32, i32
  }
  func.func @transform_4(%arg0: i32, %arg1: i32) -> (i32, i32, i32) {
    %c0_i32 = arith.constant 0 : i32
    %c0_i32_0 = arith.constant 0 : i32
    %c0_i32_1 = arith.constant 0 : i32
    return %arg0, %c0_i32, %c0_i32_0 : i32, i32, i32
  }
  func.func @transform_5(%arg0: i32, %arg1: i32) -> (i32, i32, i32) {
    %c0_i32 = arith.constant 0 : i32
    %c0_i32_0 = arith.constant 0 : i32
    return %arg0, %arg1, %c0_i32 : i32, i32, i32
  }
}

</mosaic_0001>

<bundles_post_ra>
// kernel: tpu_custom_call.1
= control target key start
LH: loop header
LB: loop body
LE: loop exit
PB: predicated region body
PF: predicated region fallthrough
CT: control target
= control target key end

     0   :  { %s2022_s0 = inlined_call_operand.hbm [shape: f32[3,128,128], index: 0, kind: input, shape index: {}]   ;;  %s2023_s1 = inlined_call_operand.hbm [shape: f32[3,128,128], index: 1, kind: input, shape index: {}]   ;;  %s2024_s2 = inlined_call_operand.vmem [shape: f32[1,128], index: 2, kind: input, shape index: {}]   ;;  %s2025_s3 = inlined_call_operand.vmem [shape: f32[1,128], index: 3, kind: input, shape index: {}]   ;;  %s2026_s4 = inlined_call_operand.hbm [shape: f32[1,16,128], index: 4, kind: input, shape index: {}]   ;;  %s2027_s5 = inlined_call_operand.hbm [shape: f32[1,16,128], index: 5, kind: output, shape index: {}]  }
   0x1   :  { %2034 = sst [smem:[#allocation15_spill]] %s2023_s1 }
   0x2   :  { %10 = vsyncpa [#allocation4], 0 }
   0x3   :  { %11 = vsyncpa [#allocation7], 0 }
   0x4   :  { %12 = vsyncpa [#allocation5], 0 }
   0x5   :  { %14 = vsyncpa [#allocation5 + $0x1], 0  ;;  %s1776_s18 = smov 0   ;;  %s1778_s19 = smov 0  }
   0x6   :  { %s1780_s20 = smov 0   ;;  %s1782_s21 = smov 0  }
   0x7   :  { %s1784_s22 = smov 0   ;;  %s1786_s23 = smov 0  }
   0x8 LB: > { %2035 = sst [smem:[#allocation13_spill]] %s1731_s22  ;;  %s965_s24 = sadd.s32 4294967295, %s1735_s23   ;;  %s1735_s23 = sphi %s1786_s23, %s20_s23   ;;  %s1731_s22 = sphi %s1784_s22, %s2049_s22   ;;  %s1727_s21 = sphi %s1782_s21, %s2048_s21   ;;  %s1723_s20 = sphi %s1780_s20, %s2052_s20   ;;  %s1719_s19 = sphi %s1778_s19, %s2051_s19   ;;  %s1715_s18 = sphi %s1776_s18, %s2050_s18  }
   0x9   : > { %s966_s25 = sadd.s32 4294967294, %s1735_s23   ;;  %s29_s26 = sadd.s32 1, %s1731_s22 }
   0xa   : > { %s151_s27 = sadd.s32 1, %s1723_s20  ;;  %p30_p0 = scmp.ge.s32.totalorder %s29_s26, 2 }
   0xb   : > { %p161_p1 = scmp.ne.s32.totalorder %s1723_s20, %s1719_s19  ;;  %p162_p2 = scmp.eq.s32.totalorder %s965_s24, 1 }
   0xc   : > { %p167_p3 = scmp.ne.s32.totalorder %s1719_s19, %s1715_s18  ;;  %s2054_s26 = smov (%p30_p0, %s29_s26), 0 }
   0xd   : > { %2036 = sst [smem:[#allocation14_spill]] %s2054_s26  ;;  %p1816_p4 = por %p162_p2, %p161_p1 }
   0xe   : > { %p168_p5 = scmp.eq.s32.totalorder %s966_s25, 1  ;;  %s147_s29 = ssub.s32 %s1731_s22, %s2054_s26 }
   0xf   : > { %s2037_s28 = scalar_select %p1816_p4, 1, 0 }
  0x10   : > { %p967_p6 = scmp.ge.s32.totalorder %s1735_s23, 1  ;;  %p149_p7 = scmp.eq.s32.totalorder %s147_s29, 0 }
  0x11   : > { %p1823_p8 = por %p168_p5, %p167_p3  ;;  %p175_p9 = scmp.lt.s32.totalorder %s1735_s23, 3 }
  0x12   : > { %s1829_s6 = scalar_select %p149_p7, %s1723_s20, %s151_s27  }
  0x13   : > { %s2038_s30 = scalar_select %p1823_p8, 1, 0 }
  0x14   : > { %p1831_p10 = pnand %p967_p6, %p175_p9  ;;  %p1835_p11 = scmp.eq.s32.totalorder %s965_s24, 0 }
  0x15   : > { %s1737_s9 = smov [#allocation6]   ;;  %s1738_s12 = smov [#allocation3]  }
  0x16   : > { %s2039_s7 = scalar_select %p1831_p10, 1, 0 }
  0x17   : > { %s2040_s8 = scalar_select %p1835_p11, 1, 0 }
  0x18   : > { %p1488_p12 = pneg %p1831_p10  ;;  %s200_s10 = sshll.u32 %s1737_s9, 4  ;;  %s201_s10 = int_to_ptr.vmem [resolvable:$true] %s200_s10 }
  0x19   : > { %s187_s13 = sshll.u32 %s1738_s12, 4  ;;  %s2042_s1 = sld [smem:[#allocation15_spill]]  ;;  %s188_s13 = int_to_ptr.vmem [resolvable:$true] %s187_s13 }
  0x1a   : > { %p1843_p13 = pnand %p1835_p11, %p1488_p12 }
  0x1c   : > { %p1855_p1 = pneg %p1843_p13 }
  0x1f   : > { %s1565_s16 = scalar_lea.hbm %s2042_s1, 6144 }
  0x20   : > { %p1566_p0 = scmp.ne.s32.totalorder %s2042_s1, %s1565_s16  ;;  %p1572_p5 = scmp.lt.u32.totalorder %s1565_s16, %s2042_s1 }
  0x22   : > { %p1568_p2 = pnand %p1855_p1, %p1566_p0 }
  0x24   : > { %p1569_p3 = pneg %p1568_p2 }
  0x26   : > { %p1574_p6 = pnand %p1572_p5, %p1569_p3 }
  0x28   : > { %1577 = shalt.err (!%p1574_p6)
}
  0x29   : > { %s1578_s9 = scalar_lea.vmem %s201_s10, 6144  ;;  %p1586_p8 = scmp.lt.s32.totalorder %s201_s10, %s201_s10 }
  0x2a   : > { %p1579_p7 = scmp.ne.s32.totalorder %s201_s10, %s1578_s9  ;;  %p1587_p4 = scmp.lt.s32.totalorder %s1578_s9, %s1578_s9 }
  0x2c   : > { %p1581_p9 = pnand %p1579_p7, %p1855_p1  ;;  %p1588_p11 = por %p1587_p4, %p1586_p8 }
  0x2e   : > { %p1582_p12 = pneg %p1581_p9 }
  0x30   : > { %p1589_p10 = pnand %p1588_p11, %p1582_p12 }
  0x32   : > { %1592 = shalt.err (!%p1589_p10)
}
  0x33   : > { %s1739_s12 = smov 128   ;;  %s1740_s14 = smov 8  }
  0x34   : > { %1494 = dma.hbm_to_vmem [thread:$0]  (!%p1843_p13), %s2042_s1, 6144, %s201_s10, [#allocation7], %s1739_s12, %s1739_s12, %s1740_s14  }
  0x35   : > { %s1593_s27 = scalar_lea.hbm %s2022_s0, 6144 }
  0x36   : > { %p1594_p4 = scmp.ne.s32.totalorder %s2022_s0, %s1593_s27  ;;  %p1600_p11 = scmp.lt.u32.totalorder %s1593_s27, %s2022_s0 }
  0x38   : > { %p1596_p8 = pnand %p1594_p4, %p1855_p1 }
  0x3a   : > { %p1597_p10 = pneg %p1596_p8 }
  0x3c   : > { %p1602_p0 = pnand %p1600_p11, %p1597_p10 }
  0x3e   : > { %1605 = shalt.err (!%p1602_p0)
}
  0x3f   : > { %s1606_s15 = scalar_lea.vmem %s188_s13, 6144  ;;  %p1614_p6 = scmp.lt.s32.totalorder %s188_s13, %s188_s13 }
  0x40   : > { %p1607_p2 = scmp.ne.s32.totalorder %s188_s13, %s1606_s15  ;;  %p1615_p7 = scmp.lt.s32.totalorder %s1606_s15, %s1606_s15 }
  0x42   : > { %p1609_p3 = pnand %p1607_p2, %p1855_p1  ;;  %p1616_p9 = por %p1615_p7, %p1614_p6 }
  0x44   : > { %p1610_p5 = pneg %p1609_p3 }
  0x46   : > { %p1617_p12 = pnand %p1616_p9, %p1610_p5 }
  0x48   : > { %1620 = shalt.err (!%p1617_p12)
}
  0x49   : > { %1491 = dma.hbm_to_vmem [thread:$0]  (!%p1843_p13), %s2022_s0, 6144, %s188_s13, [#allocation4], %s1739_s12, %s1739_s12, %s1740_s14  }
  0x4a   : > { %s1741_s10 = smov [#allocation8]   ;;  %s1621_s27 = scalar_lea.hbm %s2026_s4, 256 }
  0x4b   : > { %s222_s16 = sshll.u32 %s1741_s10, 4  ;;  %p1622_p4 = scmp.ne.s32.totalorder %s2026_s4, %s1621_s27  ;;  %s223_s16 = int_to_ptr.vmem [resolvable:$true] %s222_s16 }
  0x4c   : > { %p1628_p11 = scmp.lt.u32.totalorder %s1621_s27, %s2026_s4 }
  0x4d   : > { %p1624_p8 = pnand %p1622_p4, %p1855_p1 }
  0x4f   : > { %p1625_p10 = pneg %p1624_p8 }
  0x51   : > { %p1630_p0 = pnand %p1628_p11, %p1625_p10 }
  0x53   : > { %1633 = shalt.err (!%p1630_p0)
}
  0x54   : > { %s1634_s13 = scalar_lea.vmem %s223_s16, 256  ;;  %p1642_p6 = scmp.lt.s32.totalorder %s223_s16, %s223_s16 }
  0x55   : > { %p1635_p2 = scmp.ne.s32.totalorder %s223_s16, %s1634_s13  ;;  %p1643_p7 = scmp.lt.s32.totalorder %s1634_s13, %s1634_s13 }
  0x57   : > { %p1637_p3 = pnand %p1635_p2, %p1855_p1  ;;  %p1644_p9 = por %p1643_p7, %p1642_p6 }
  0x59   : > { %p1638_p5 = pneg %p1637_p3 }
  0x5b   : > { %p1645_p12 = pnand %p1644_p9, %p1638_p5 }
  0x5d   : > { %1648 = shalt.err (!%p1645_p12)
}
  0x5e   : > { %1497 = dma.hbm_to_vmem [thread:$0]  (!%p1843_p13), %s2026_s4, 256, %s223_s16, [#allocation7], %s1739_s12, %s1739_s12, %s1740_s14  }
  0x5f   : > { %p2044_p4 = scmp.ne.s32.totalorder %s2039_s7, 0 }
  0x60   : > { %p2045_p1 = scmp.ne.s32.totalorder (!%p2044_p4), %s2040_s8, 0 }
  0x61   : > { %238 = sbr.rel (%p2044_p4) target bundleno = 727 (0x2d7), region = 40 }
  0x68   : > { %1702 = dma.done.wait (%p2045_p1), [#allocation4], 6144  }
  0x69   : > { %1704 = vsyncadd (%p2045_p1), [#allocation4], 4294961152 }
  0x6a   : > { %1706 = dma.done.wait (%p2045_p1), [#allocation7], 6400  }
  0x6b   : > { %1708 = vsyncadd (%p2045_p1), [#allocation7], 4294960896  ;;  %v1742_v0 = vmov 0.0   ;;  %v1743_v1 = vmov 0.0|0.0   ;;  %v296_v2 = vld [vmem:[#allocation3 + $0x80] sm:$0xff]  ;;  %v297_v3 = vld [vmem:[#allocation3 + $0x88] sm:$0xff] }
  0x6c   : > { %269 = vst [vmem:[#allocation2] sm:$0x1] %v1742_v0  ;;  %270 = vst [vmem:[#allocation2 + $0x11] sm:$0x1] %v1742_v0  ;;  %1398 = vmatprep.subr.bf16.mxu1 %v1743_v1  ;;  %v298_v4 = vld [vmem:[#allocation3 + $0x90] sm:$0xff]  ;;  %v1302_v5 = vpack.c.bf16 %v297_v3, %v296_v2  ;;  %v299_v6 = vld [vmem:[#allocation3 + $0x98] sm:$0xff] }
  0x6d   : > { %v1306_v7 = vpack.c.bf16 %v299_v6, %v298_v4  ;;  %v300_v8 = vld [vmem:[#allocation3 + $0xa0] sm:$0xff]  ;;  %v301_v9 = vld [vmem:[#allocation3 + $0xa8] sm:$0xff]  ;;  %v302_v12 = vld [vmem:[#allocation3 + $0xb0] sm:$0xff]  ;;  %vm1744_vm0 = vmmov 0   ;;  %s977_s11 = sshll.u32 %s1727_s21, 3  ;;  %s266_s12 = sand.u32 1, %s1719_s19  }
  0x6e   : > { %1303 = vmatprep.subr.bf16.mxu0 %v1302_v5  ;;  %v1310_v10 = vpack.c.bf16 %v301_v9, %v300_v8  ;;  %v271_v11 = vld [vmem:[#allocation8] sm:$0xff]  ;;  %v303_v13 = vld [vmem:[#allocation3 + $0xb8] sm:$0xff]  ;;  %v272_v14 = vld [vmem:[#allocation8 + $0x8] sm:$0xff]  ;;  %1229 = vmatprep.mubr.msk.f32.mxu1 %vm1744_vm0, %v1742_v0  ;;  %s1943_s25 = scalar_lea.vmem [#allocation2], %s977_s11  ;;  %s975_s14 = sshll.u32 %s266_s12, 3 }
  0x6f   : > { %1305 = vmatpush3.bf16.msra.mxu0 %v1302_v5  ;;  %273 = vst [vmem:[#allocation2 + $0x1] sm:$0xff] %v271_v11  ;;  %1124 = vmatprep.mubr.f32.mxu0 %v271_v11  ;;  %274 = vst [vmem:[#allocation2 + $0x9] sm:$0xff] %v272_v14  ;;  %v1314_v15 = vpack.c.bf16 %v303_v13, %v302_v12  ;;  %v304_v16 = vld [vmem:[#allocation3 + $0xc0] sm:$0xff]  ;;  %v305_v17 = vld [vmem:[#allocation3 + $0xc8] sm:$0xff]  ;;  %s984_s16 = sshll.u32 %s1727_s21, 7  ;;  %s268_s17 = scalar_lea.vmem [#allocation9], %s975_s14 }
  0x70   : > { %1307 = vmatprep.subr.bf16.mxu0 %v1306_v7  ;;  %v1318_v18 = vpack.c.bf16 %v305_v17, %v304_v16  ;;  %v306_v19 = vld [vmem:[#allocation3 + $0xd0] sm:$0xff]  ;;  %v307_v20 = vld [vmem:[#allocation3 + $0xd8] sm:$0xff]  ;;  %v308_v22 = vld [vmem:[#allocation3 + $0xe0] sm:$0xff]  ;;  %s867_s24 = sshll.u32 %s268_s17, 4  ;;  %s1975_s9 = scalar_lea.hbm %s2027_s5, %s984_s16  ;;  %s1977_s24 = int_to_ptr.vmem [resolvable:$true] %s867_s24 }
  0x71   : > { %v1322_v21 = vpack.c.bf16 %v307_v20, %v306_v19  ;;  %v309_v23 = vld [vmem:[#allocation3 + $0xe8] sm:$0xff]  ;;  %v594_v24 = vld [vmem:[#allocation6 + $0x80] sm:$0xff]  ;;  %v596_v26 = vld [vmem:[#allocation6 + $0x90] sm:$0xff]  ;;  %s852_s15 = scalar_lea.sflag [#allocation5], %s266_s12  ;;  %s1649_s13 = scalar_lea.vmem %s1977_s24, 128 }
  0x72   : > { %v595_v25 = vld [vmem:[#allocation6 + $0x88] sm:$0xff]  ;;  %v597_v28 = vld [vmem:[#allocation6 + $0x98] sm:$0xff]  ;;  %v1326_v29 = vpack.c.bf16 %v309_v23, %v308_v22  ;;  %v310_v30 = vld [vmem:[#allocation3 + $0xf0] sm:$0xff]  ;;  %p1650_p13 = scmp.ne.s32.totalorder %s1977_s24, %s1649_s13  ;;  %p2046_p8 = scmp.ne.s32.totalorder %s2037_s28, 0 }
  0x73   : > { %1309 = vmatpush3.bf16.msra.mxu0 %v1306_v7  ;;  %v1399_v27 = vpack.c.bf16 %v595_v25, %v594_v24  ;;  %v1402_v31 = vpack.c.bf16 %v597_v28, %v596_v26  ;;  %v311_v32 = vld [vmem:[#allocation3 + $0xf8] sm:$0xff]  ;;  %v598_v33 = vld [vmem:[#allocation6 + $0xa0] sm:$0xff]  ;;  %v599_v34 = vld [vmem:[#allocation6 + $0xa8] sm:$0xff]  ;;  %s1745_s21 = smov [#allocation9]  }
  0x74   : > { %1311 = vmatprep.subr.bf16.mxu0 %v1310_v10  ;;  %v1330_v35 = vpack.c.bf16 %v311_v32, %v310_v30  ;;  %v277_v36 = vld [vmem:[#allocation3] sm:$0xff]  ;;  %v1405_v37 = vpack.c.bf16 %v599_v34, %v598_v33  ;;  %v278_v38 = vld [vmem:[#allocation3 + $0x8] sm:$0xff]  ;;  %v600_v39 = vld [vmem:[#allocation6 + $0xb0] sm:$0xff]  ;;  %p1651_p10 = pnand %p1650_p13, %p2046_p8  ;;  %s1653_s1 = sshll.u32 %s1745_s21, 4  ;;  %s1654_s1 = int_to_ptr.vmem [resolvable:$false] %s1653_s1 }
  0x75   : > { %1400 = vmatpush3.bf16.msra.mxu1 %v1399_v27  ;;  %v601_v40 = vld [vmem:[#allocation6 + $0xb8] sm:$0xff]  ;;  %v1334_v41 = vpack.c.bf16 %v278_v38, %v277_v36  ;;  %v279_v42 = vld [vmem:[#allocation3 + $0x10] sm:$0xff]  ;;  %v602_v45 = vld [vmem:[#allocation6 + $0xc0] sm:$0xff]  ;;  %s1655_s22 = scalar_lea.vmem %s1654_s1, 256  ;;  %p1656_p0 = scmp.lt.s32.totalorder %s1977_s24, %s1654_s1 }
  0x76   : > { %1401 = vmatprep.subr.bf16.mxu1 %v1743_v1  ;;  %v1408_v43 = vpack.c.bf16 %v601_v40, %v600_v39  ;;  %v280_v44 = vld [vmem:[#allocation3 + $0x18] sm:$0xff]  ;;  %v603_v46 = vld [vmem:[#allocation6 + $0xc8] sm:$0xff]  ;;  %v281_v50 = vld [vmem:[#allocation3 + $0x20] sm:$0xff]  ;;  %p1652_p11 = pneg %p1651_p10  ;;  %p1657_p2 = scmp.lt.s32.totalorder %s1655_s22, %s1649_s13 }
  0x77   : > { %1313 = vmatpush3.bf16.msra.mxu0 %v1310_v10  ;;  %v1338_v47 = vpack.c.bf16 %v280_v44, %v279_v42  ;;  %v275_v48 = vld [vmem:[#allocation2] sm:$0xff]  ;;  %v1411_v49 = vpack.c.bf16 %v603_v46, %v602_v45  ;;  %v283_v53 = vld [vmem:[#allocation3 + $0x30] sm:$0xff]  ;;  %v284_v54 = vld [vmem:[#allocation3 + $0x38] sm:$0xff] }
  0x78   : > { %1315 = vmatprep.subr.bf16.mxu0 %v1314_v15  ;;  %v282_v51 = vld [vmem:[#allocation3 + $0x28] sm:$0xff]  ;;  %v1346_v55 = vpack.c.bf16 %v284_v54, %v283_v53  ;;  %v285_v56 = vld [vmem:[#allocation3 + $0x40] sm:$0xff]  ;;  %v287_v59 = vld [vmem:[#allocation3 + $0x50] sm:$0xff]  ;;  %p1658_p3 = por %p1657_p2, %p1656_p0 }
  0x79   : > { %1403 = vmatpush3.bf16.msra.mxu1 %v1402_v31  ;;  %v1342_v52 = vpack.c.bf16 %v282_v51, %v281_v50  ;;  %v286_v57 = vld [vmem:[#allocation3 + $0x48] sm:$0xff]  ;;  %v288_v60 = vld [vmem:[#allocation3 + $0x58] sm:$0xff]  ;;  %v289_v62 = vld [vmem:[#allocation3 + $0x60] sm:$0xff] }
  0x7a   : > { %1404 = vmatprep.subr.bf16.mxu1 %v1743_v1  ;;  %v1350_v58 = vpack.c.bf16 %v286_v57, %v285_v56  ;;  %v1354_v61 = vpack.c.bf16 %v288_v60, %v287_v59  ;;  %v290_v63 = vld [vmem:[#allocation3 + $0x68] sm:$0xff]  ;;  %v291_v3 = vld [vmem:[#allocation3 + $0x70] sm:$0xff]  ;;  %v292_v4 = vld [vmem:[#allocation3 + $0x78] sm:$0xff]  ;;  %p1659_p5 = pnand %p1658_p3, %p1652_p11 }
  0x7b   : > { %1317 = vmatpush3.bf16.msra.mxu0 %v1314_v15  ;;  %v1358_v2 = vpack.c.bf16 %v290_v63, %v289_v62  ;;  %v1362_v5 = vpack.c.bf16 %v292_v4, %v291_v3  ;;  %v465_v6 = vld [vmem:[#allocation3 + $0x100] sm:$0xff]  ;;  %v466_v7 = vld [vmem:[#allocation3 + $0x108] sm:$0xff]  ;;  %v467_v9 = vld [vmem:[#allocation3 + $0x110] sm:$0xff] }
  0x7c   : > { %1319 = vmatprep.subr.bf16.mxu0 %v1318_v18  ;;  %v1366_v8 = vpack.c.bf16 %v466_v7, %v465_v6  ;;  %v468_v10 = vld [vmem:[#allocation3 + $0x118] sm:$0xff]  ;;  %v276_v11 = vld [vmem:[#allocation2 + $0x8] sm:$0xff]  ;;  %v470_v15 = vld [vmem:[#allocation3 + $0x128] sm:$0xff] }
  0x7d   : > { %1406 = vmatpush3.bf16.msra.mxu1 %v1405_v37  ;;  %v1370_v12 = vpack.c.bf16 %v468_v10, %v467_v9  ;;  %v462_v13 = vld [vmem:[#allocation2 + $0x2] sm:$0xff]  ;;  %v473_v20 = vld [vmem:[#allocation3 + $0x140] sm:$0xff]  ;;  %v476_v24 = vld [vmem:[#allocation3 + $0x158] sm:$0xff] }
  0x7e   : > { %1407 = vmatprep.subr.bf16.mxu1 %v1743_v1  ;;  %v471_v17 = vld [vmem:[#allocation3 + $0x130] sm:$0xff]  ;;  %v477_v26 = vld [vmem:[#allocation3 + $0x160] sm:$0xff]  ;;  %v478_v27 = vld [vmem:[#allocation3 + $0x168] sm:$0xff] }
  0x7f   : > { %1321 = vmatpush3.bf16.msra.mxu0 %v1318_v18  ;;  %v472_v18 = vld [vmem:[#allocation3 + $0x138] sm:$0xff]  ;;  %v475_v23 = vld [vmem:[#allocation3 + $0x150] sm:$0xff]  ;;  %v1390_v28 = vpack.c.bf16 %v478_v27, %v477_v26  ;;  %v606_v36 = vld [vmem:[#allocation6 + $0xe0] sm:$0xff] }
  0x80   : > { %1323 = vmatprep.subr.bf16.mxu0 %v1322_v21  ;;  %v1378_v19 = vpack.c.bf16 %v472_v18, %v471_v17  ;;  %v1386_v25 = vpack.c.bf16 %v476_v24, %v475_v23  ;;  %v480_v30 = vld [vmem:[#allocation3 + $0x178] sm:$0xff]  ;;  %v604_v33 = vld [vmem:[#allocation6 + $0xd0] sm:$0xff]  ;;  %v607_v37 = vld [vmem:[#allocation6 + $0xe8] sm:$0xff] }
  0x81   : > { %1409 = vmatpush3.bf16.msra.mxu1 %v1408_v43  ;;  %v463_v32 = vld [vmem:[#allocation2 + $0xa] sm:$0xff]  ;;  %v1417_v38 = vpack.c.bf16 %v607_v37, %v606_v36  ;;  %v976_v42 = vld [vmem:[%s2024_s2] ss:$0 sm:$0xff]  ;;  %v578_v56 = vld [vmem:[#allocation6 + $0x20] sm:$0xff] }
  0x82   : > { %1410 = vmatprep.subr.bf16.mxu1 %v1743_v1  ;;  %v605_v34 = vld [vmem:[#allocation6 + $0xd8] sm:$0xff]  ;;  %v608_v39 = vld [vmem:[#allocation6 + $0xf0] sm:$0xff]  ;;  %v575_v50 = vld [vmem:[#allocation6 + $0x8] sm:$0xff] }
  0x83   : > { %1325 = vmatpush3.bf16.msra.mxu0 %v1322_v21  ;;  %v474_v21 = vld [vmem:[#allocation3 + $0x148] sm:$0xff]  ;;  %v609_v40 = vld [vmem:[#allocation6 + $0xf8] sm:$0xff]  ;;  %v580_v59 = vld [vmem:[#allocation6 + $0x30] sm:$0xff] }
  0x84   : > { %1327 = vmatprep.subr.bf16.mxu0 %v1326_v29  ;;  %v1382_v22 = vpack.c.bf16 %v474_v21, %v473_v20  ;;  %v577_v53 = vld [vmem:[#allocation6 + $0x18] sm:$0xff]  ;;  %v579_v57 = vld [vmem:[#allocation6 + $0x28] sm:$0xff]  ;;  %v582_v62 = vld [vmem:[#allocation6 + $0x40] sm:$0xff] }
  0x85   : > { %1412 = vmatpush3.bf16.msra.mxu1 %v1411_v49  ;;  %v574_v49 = vld [vmem:[#allocation6] sm:$0xff]  ;;  %v581_v60 = vld [vmem:[#allocation6 + $0x38] sm:$0xff]  ;;  %v583_v63 = vld [vmem:[#allocation6 + $0x48] sm:$0xff] }
  0x86   : > { %1413 = vmatprep.subr.bf16.mxu1 %v1743_v1  ;;  %v1423_v51 = vpack.c.bf16 %v575_v50, %v574_v49  ;;  %v584_v3 = vld [vmem:[#allocation6 + $0x50] sm:$0xff]  ;;  %v585_v4 = vld [vmem:[#allocation6 + $0x58] sm:$0xff]  ;;  %v586_v6 = vld [vmem:[#allocation6 + $0x60] sm:$0xff] }
  0x87   : > { %1329 = vmatpush3.bf16.msra.mxu0 %v1326_v29  ;;  %v479_v29 = vld [vmem:[#allocation3 + $0x170] sm:$0xff]  ;;  %v587_v7 = vld [vmem:[#allocation6 + $0x68] sm:$0xff]  ;;  %v589_v10 = vld [vmem:[#allocation6 + $0x78] sm:$0xff] }
  0x88   : > { %1331 = vmatprep.subr.bf16.mxu0 %v1330_v35  ;;  %v1394_v31 = vpack.c.bf16 %v480_v30, %v479_v29  ;;  %v588_v9 = vld [vmem:[#allocation6 + $0x70] sm:$0xff]  ;;  %v759_v20 = vld [vmem:[#allocation6 + $0x128] sm:$0xff]  ;;  %v761_v23 = vld [vmem:[#allocation6 + $0x138] sm:$0xff] }
  0x89   : > { %v763_v26 = vld [vmem:[#allocation6 + $0x148] sm:$0xff]  ;;  %v766_v30 = vld [vmem:[#allocation6 + $0x160] sm:$0xff] }
  0x8b   : > { %1333 = vmatpush3.bf16.msra.mxu0 %v1330_v35  ;;  %v1414_v35 = vpack.c.bf16 %v605_v34, %v604_v33  ;;  %v768_v33 = vld [vmem:[#allocation6 + $0x170] sm:$0xff]  ;;  %v769_v34 = vld [vmem:[#allocation6 + $0x178] sm:$0xff] }
  0x8c   : > { %1335 = vmatprep.subr.bf16.mxu0 %v1334_v41 }
  0x8d   : > { %1415 = vmatpush3.bf16.msra.mxu1 %v1414_v35  ;;  %v1468_v35 = vpack.c.bf16 %v769_v34, %v768_v33 }
  0x8e   : > { %1125 = vmatmul.mubr.f32.vlgmr.msra.gmra.mrb[0].mxu0 %v272_v14  ;;  %v469_v14 = vld [vmem:[#allocation3 + $0x120] sm:$0xff]  ;;  %1416 = vmatprep.subr.bf16.mxu1 %v1743_v1 }
  0x8f   : > { %1337 = vmatpush3.bf16.msra.mxu0 %v1334_v41  ;;  %1159 = vmatprep.mubr.f32.mxu0 %v275_v48  ;;  %v1374_v16 = vpack.c.bf16 %v470_v15, %v469_v14  ;;  %v1420_v41 = vpack.c.bf16 %v609_v40, %v608_v39  ;;  %v756_v15 = vld [vmem:[#allocation6 + $0x110] sm:$0xff] }
  0x90   : > { %1339 = vmatprep.subr.bf16.mxu0 %v1338_v47 }
  0x91   : > { %1418 = vmatpush3.bf16.msra.mxu1 %v1417_v38 }
  0x92   : > { %1419 = vmatprep.subr.bf16.mxu1 %v1743_v1 }
  0x93   : > { %1341 = vmatpush3.bf16.msra.mxu0 %v1338_v47 }
  0x94   : > { %1343 = vmatprep.subr.bf16.mxu0 %v1342_v52 }
  0x95   : > { %1421 = vmatpush3.bf16.msra.mxu1 %v1420_v41 }
  0x96   : > { %1422 = vmatprep.subr.bf16.mxu1 %v1743_v1 }
  0x97   : > { %1345 = vmatpush3.bf16.msra.mxu0 %v1342_v52  ;;  %v576_v52 = vld [vmem:[#allocation6 + $0x10] sm:$0xff] }
  0x98   : > { %1347 = vmatprep.subr.bf16.mxu0 %v1346_v55 }
  0x9b   : > { %1349 = vmatpush3.bf16.msra.mxu0 %v1346_v55  ;;  %v1426_v55 = vpack.c.bf16 %v577_v53, %v576_v52 }
  0x9c   : > { %1351 = vmatprep.subr.bf16.mxu0 %v1350_v58 }
  0x9f   : > { %1353 = vmatpush3.bf16.msra.mxu0 %v1350_v58  ;;  %v1429_v58 = vpack.c.bf16 %v579_v57, %v578_v56 }
  0xa0   : > { %1355 = vmatprep.subr.bf16.mxu0 %v1354_v61 }
  0xa3   : > { %1357 = vmatpush3.bf16.msra.mxu0 %v1354_v61  ;;  %v1432_v61 = vpack.c.bf16 %v581_v60, %v580_v59 }
  0xa4   : > { %1359 = vmatprep.subr.bf16.mxu0 %v1358_v2 }
  0xa7   : > { %1361 = vmatpush3.bf16.msra.mxu0 %v1358_v2  ;;  %v1435_v2 = vpack.c.bf16 %v583_v63, %v582_v62 }
  0xa8   : > { %1363 = vmatprep.subr.bf16.mxu0 %v1362_v5 }
  0xab   : > { %1365 = vmatpush3.bf16.msra.mxu0 %v1362_v5  ;;  %v1438_v5 = vpack.c.bf16 %v585_v4, %v584_v3 }
  0xac   : > { %1367 = vmatprep.subr.bf16.mxu0 %v1366_v8 }
  0xae   : > { %1160 = vmatmul.mubr.f32.vlgmr.msra.gmra.mrb[0].mxu0 %v276_v11  ;;  %v1444_v11 = vpack.c.bf16 %v589_v10, %v588_v9 }
  0xaf   : > { %1369 = vmatpush3.bf16.msra.mxu0 %v1366_v8  ;;  %1194 = vmatprep.mubr.f32.mxu0 %v462_v13  ;;  %v1441_v8 = vpack.c.bf16 %v587_v7, %v586_v6  ;;  %v755_v13 = vld [vmem:[#allocation6 + $0x108] sm:$0xff] }
  0xb0   : > { %1371 = vmatprep.subr.bf16.mxu0 %v1370_v12 }
  0xb3   : > { %1373 = vmatpush3.bf16.msra.mxu0 %v1370_v12  ;;  %v754_v12 = vld [vmem:[#allocation6 + $0x100] sm:$0xff] }
  0xb4   : > { %1375 = vmatprep.subr.bf16.mxu0 %v1374_v16  ;;  %v1447_v14 = vpack.c.bf16 %v755_v13, %v754_v12 }
  0xb7   : > { %1377 = vmatpush3.bf16.msra.mxu0 %v1374_v16  ;;  %v757_v16 = vld [vmem:[#allocation6 + $0x118] sm:$0xff] }
  0xb8   : > { %1379 = vmatprep.subr.bf16.mxu0 %v1378_v19  ;;  %v1450_v18 = vpack.c.bf16 %v757_v16, %v756_v15 }
  0xbb   : > { %1381 = vmatpush3.bf16.msra.mxu0 %v1378_v19  ;;  %v758_v19 = vld [vmem:[#allocation6 + $0x120] sm:$0xff] }
  0xbc   : > { %1383 = vmatprep.subr.bf16.mxu0 %v1382_v22  ;;  %v1453_v21 = vpack.c.bf16 %v759_v20, %v758_v19 }
  0xbf   : > { %1385 = vmatpush3.bf16.msra.mxu0 %v1382_v22  ;;  %v760_v22 = vld [vmem:[#allocation6 + $0x130] sm:$0xff] }
  0xc0   : > { %1387 = vmatprep.subr.bf16.mxu0 %v1386_v25  ;;  %v1456_v24 = vpack.c.bf16 %v761_v23, %v760_v22 }
  0xc3   : > { %1389 = vmatpush3.bf16.msra.mxu0 %v1386_v25  ;;  %v762_v25 = vld [vmem:[#allocation6 + $0x140] sm:$0xff] }
  0xc4   : > { %1391 = vmatprep.subr.bf16.mxu0 %v1390_v28  ;;  %v1459_v27 = vpack.c.bf16 %v763_v26, %v762_v25 }
  0xc7   : > { %1393 = vmatpush3.bf16.msra.mxu0 %v1390_v28  ;;  %v765_v28 = vld [vmem:[#allocation6 + $0x158] sm:$0xff] }
  0xc8   : > { %1395 = vmatprep.subr.bf16.mxu0 %v1394_v31 }
  0xcb   : > { %1397 = vmatpush3.bf16.msra.mxu0 %v1394_v31  ;;  %v767_v31 = vld [vmem:[#allocation6 + $0x168] sm:$0xff] }
  0xce   : > { %1195 = vmatmul.mubr.f32.vlgmr.msra.gmra.mrb[0].mxu0 %v463_v32  ;;  %v1465_v32 = vpack.c.bf16 %v767_v31, %v766_v30 }
 0x1a1   : > { %v1196_v43 = vpop.f32.mrb[0].mxu0 }
 0x1a2   : > { %v566_v44 = vadd.f32 %v1196_v43, %v976_v42  ;;  %v547_v45 = vpop.f32.mrb[1].mxu0  ;;  %v982_v43 = vld [vmem:[%s2025_s3] ss:$0 sm:$0xff] }
 0x1a3   : > { %v565_v46 = vadd.f32 %v976_v42, %v547_v45 }
 0x1a4   : > { %v568_v47 = vmax.f32 %v566_v44, 0.0 }
 0x1a5   : > { %v567_v48 = vmax.f32 %v565_v46, 0.0 }
 0x1a6   : > { %570 = vst [vmem:[#allocation2 + $0x9] sm:$0xff] %v568_v47 }
 0x1a7   : > { %569 = vst [vmem:[#allocation2 + $0x1] sm:$0xff] %v567_v48 }
 0x1ae   : > { %v979_v54 = vld [vmem:[%s1943_s25 + $0x1] sm:$0xff] }
 0x1af   : > { %1230 = vmatmul.mubr.f32.vlgmr.msra.gmra.mrb[0].mxu1 %v979_v54  ;;  %v573_v17 = vld [vmem:[%s1943_s25] sm:$0xff] }
 0x1b0   : > { %1424 = vmatpush3.bf16.msra.mxu1 %v1423_v51  ;;  %1264 = vmatprep.mubr.msk.f32.mxu1 %vm1744_vm0, %v1742_v0  ;;  %v981_v36 = vld [vmem:[%s1943_s25 + $0x2] sm:$0xff] }
 0x1b1   : > { %1425 = vmatprep.subr.bf16.mxu1 %v1743_v1 }
 0x1b4   : > { %1427 = vmatpush3.bf16.msra.mxu1 %v1426_v55 }
 0x1b5   : > { %1428 = vmatprep.subr.bf16.mxu1 %v1743_v1 }
 0x1b8   : > { %1430 = vmatpush3.bf16.msra.mxu1 %v1429_v58 }
 0x1b9   : > { %1431 = vmatprep.subr.bf16.mxu1 %v1743_v1 }
 0x1bc   : > { %1433 = vmatpush3.bf16.msra.mxu1 %v1432_v61 }
 0x1bd   : > { %1434 = vmatprep.subr.bf16.mxu1 %v1743_v1 }
 0x1c0   : > { %1436 = vmatpush3.bf16.msra.mxu1 %v1435_v2 }
 0x1c1   : > { %1437 = vmatprep.subr.bf16.mxu1 %v1743_v1 }
 0x1c4   : > { %1439 = vmatpush3.bf16.msra.mxu1 %v1438_v5 }
 0x1c5   : > { %1440 = vmatprep.subr.bf16.mxu1 %v1743_v1 }
 0x1c8   : > { %1442 = vmatpush3.bf16.msra.mxu1 %v1441_v8 }
 0x1c9   : > { %1443 = vmatprep.subr.bf16.mxu1 %v1743_v1 }
 0x1cc   : > { %1445 = vmatpush3.bf16.msra.mxu1 %v1444_v11 }
 0x1cd   : > { %1446 = vmatprep.subr.bf16.mxu1 %v1743_v1 }
 0x1cf   : > { %1265 = vmatmul.mubr.f32.vlgmr.msra.gmra.mrb[2].mxu1 %v573_v17 }
 0x1d0   : > { %1448 = vmatpush3.bf16.msra.mxu1 %v1447_v14  ;;  %1299 = vmatprep.mubr.msk.f32.mxu1 %vm1744_vm0, %v1742_v0  ;;  %v764_v0 = vld [vmem:[#allocation6 + $0x150] sm:$0xff] }
 0x1d1   : > { %1449 = vmatprep.subr.bf16.mxu1 %v1743_v1  ;;  %v1462_v29 = vpack.c.bf16 %v765_v28, %v764_v0 }
 0x1d4   : > { %1451 = vmatpush3.bf16.msra.mxu1 %v1450_v18 }
 0x1d5   : > { %1452 = vmatprep.subr.bf16.mxu1 %v1743_v1 }
 0x1d8   : > { %1454 = vmatpush3.bf16.msra.mxu1 %v1453_v21 }
 0x1d9   : > { %1455 = vmatprep.subr.bf16.mxu1 %v1743_v1 }
 0x1dc   : > { %1457 = vmatpush3.bf16.msra.mxu1 %v1456_v24 }
 0x1dd   : > { %1458 = vmatprep.subr.bf16.mxu1 %v1743_v1 }
 0x1e0   : > { %1460 = vmatpush3.bf16.msra.mxu1 %v1459_v27 }
 0x1e1   : > { %1461 = vmatprep.subr.bf16.mxu1 %v1743_v1 }
 0x1e4   : > { %1463 = vmatpush3.bf16.msra.mxu1 %v1462_v29 }
 0x1e5   : > { %1464 = vmatprep.subr.bf16.mxu1 %v1743_v1 }
 0x1e8   : > { %1466 = vmatpush3.bf16.msra.mxu1 %v1465_v32 }
 0x1e9   : > { %1467 = vmatprep.subr.bf16.mxu1 %v1743_v1 }
 0x1ec   : > { %1469 = vmatpush3.bf16.msra.mxu1 %v1468_v35 }
 0x1ef   : > { %1300 = vmatmul.mubr.f32.vlgmr.msra.gmra.mrb[4].mxu1 %v981_v36 }
 0x282   : > { %v676_v37 = vpop.f32.mrb[0].mxu1 }
 0x283   : > { %v1231_v38 = vpop.f32.mrb[1].mxu1 }
 0x2a2   : > { %v746_v39 = vpop.f32.mrb[2].mxu1 }
 0x2a3   : > { %v747_v40 = vadd.f32 %v746_v39, %v676_v37  ;;  %v1266_v41 = vpop.f32.mrb[3].mxu1 }
 0x2c2   : > { %v836_v42 = vpop.f32.mrb[4].mxu1 }
 0x2c3   : > { %v840_v44 = vadd.f32 %v836_v42, %v747_v40  ;;  %v1301_v45 = vpop.f32.mrb[5].mxu1 }
 0x2c5   : > { %v848_v1 = vadd.f32 %v982_v43, %v840_v44 }
 0x2c7   : > { %v849_v46 = vmax.f32 %v848_v1, 0.0 }
 0x2c9   : > { %850 = vst [vmem:[%s268_s17] sm:$0xff] %v849_v46 }
 0x2ca   : > { %1662 = shalt.err (!%p1659_p5)
}
 0x2cb   : > { %s1663_s7 = scalar_lea.hbm %s1975_s9, 128  ;;  %s1667_s25 = scalar_lea.hbm %s2027_s5, 256 }
 0x2cc   : > { %p1664_p6 = scmp.ne.s32.totalorder %s1975_s9, %s1663_s7  ;;  %p1668_p12 = scmp.lt.u32.totalorder %s1975_s9, %s2027_s5 }
 0x2cd   : > { %p1669_p4 = scmp.lt.u32.totalorder %s1667_s25, %s1663_s7  ;;  %p1671_p13 = scmp.lt.u32.totalorder %s1663_s7, %s1975_s9 }
 0x2ce   : > { %p1665_p7 = pnand %p1664_p6, %p2046_p8 }
 0x2cf   : > { %p1670_p1 = por %p1669_p4, %p1668_p12 }
 0x2d0   : > { %p1666_p9 = pneg %p1665_p7 }
 0x2d1   : > { %p1672_p10 = por %p1671_p13, %p1670_p1 }
 0x2d3   : > { %p1673_p11 = pnand %p1672_p10, %p1666_p9 }
 0x2d5   : > { %1676 = shalt.err (!%p1673_p11)
}
 0x2d6   : > { %1486 = dma.vmem_to_hbm [thread:$0]  (%p2046_p8), %s1977_s24, 128, %s1975_s9, %s852_s15  }
 0x2d7 PF: > { %p1508_p0 = scmp.ge.s32.totalorder %s1735_s23, 2  ;;  %s879_s26 = sand.u32 1, %s1715_s18  }
 0x2d8   : > { %p2047_p2 = scmp.ne.s32.totalorder %s2038_s30, 0  ;;  %s880_s10 = scalar_lea.sflag [#allocation5], %s879_s26 }
 0x2da   : > { %p1499_p3 = pnand %p1508_p0, %p2047_p2 }
 0x2dc   : > { %1710 = dma.done.wait (!%p1499_p3), %s880_s10, 128  }
 0x2dd   : > { %1712 = vsyncadd (!%p1499_p3), %s880_s10, 4294967168  ;;  %s20_s23 = sadd.s32 1, %s1735_s23   ;;  %s2048_s21 = sld [smem:[#allocation13_spill]] }
 0x2de   : > { %p17_p5 = scmp.ge.s32.totalorder %s20_s23, 4   ;;  %s2049_s22 = sld [smem:[#allocation14_spill]] }
 0x2df   : > { %s2050_s18 = smov %s1719_s19  ;;  %s2051_s19 = smov %s1723_s20 }
 0x2e0   : > { %s2052_s20 = smov %s1829_s6  ;;  %19 = sbr.rel (!%p17_p5) target bundleno = 8 (0x8), region = 93 }
 0x2e7   :  { %885 = vsyncpa [#allocation4], 1 }
 0x2e8   :  { %887 = vsyncpa [#allocation4 + $0x1], 1 }
 0x2e9   :  { %888 = vsyncpa [#allocation7], 1 }
 0x2ea   :  { %889 = vsyncpa [#allocation5], 1 }
 0x2eb   :  { %891 = vsyncpa [#allocation5 + $0x1], 1 }

</bundles_post_ra>
